<compile_context>
chip_gen: v6e
topology: v6e:2x2x1
jax: 0.10.0
libtpu: 0.0.40
codegen_flags: <defaults>
</compile_context>

<pallas_src>
import jax
import jax.numpy as jnp
from jax.experimental import pallas as pl
from jax.experimental.pallas import tpu as pltpu
import numpy as np


def attention_kernel(w_ref, b_ref, x_ref, mask_ref, out_ref):
    # Widen once; x may be streamed as bf16 to halve HBM read bytes.
    x = x_ref[...].astype(jnp.float32)      # (TB, S, F)
    w = w_ref[...]                          # (1, F)   f32, VMEM-resident
    b = b_ref[...]                          # (1, S)   f32, VMEM-resident
    mask = mask_ref[...].astype(jnp.float32)  # (TB, S)

    # Scores: contract over F (the lane axis) with a VPU multiply + lane
    # reduction.  Equivalent to (x.view(-1,F) @ W).view(-1,S) but without the
    # layout-hostile reshape and the N=1 MXU matmul.
    eij = jnp.sum(x * w, axis=-1)           # (TB, S)
    eij = jnp.tanh(eij + b)                 # bias (1, S) broadcast over batch

    a = jnp.exp(eij) * mask                 # (TB, S)
    denom = jnp.sum(a, axis=-1, keepdims=True)  # (TB, 1)
    # Exact divide (bit-faithful to torch).  The kernel is memory-bound, so
    # the VALU divide is free; the earlier approx reciprocal cost 2.7e-3 rel
    # error and failed the check.
    # NOTE: the +1e-10 is added AFTER normalization, faithful to the torch code.
    a = a / denom + 1e-10

    # Weighted sum over the step dimension.
    # TODO(synk): on v7x, if the XLU becomes the critical slot, this second
    # contraction could be moved to the otherwise-idle MXU via a batched
    # lax.dot_general('bs,bsf->bf').
    out_ref[...] = jnp.sum(x * a[:, :, None], axis=1).astype(out_ref.dtype)


def _vmem_config():
    """Generation-aware (x_tile_budget_bytes, vmem_limit_bytes)."""
    try:
        vmem_cap = int(pltpu.get_tpu_info().vmem_capacity_bytes)
    except Exception:
        vmem_cap = 128 * 1024 * 1024  # conservative fallback (v5e/v6e class)
    if vmem_cap >= 100 * 1024 * 1024:
        # v5e / v6e: 128 MiB physical VMEM.  Peak ~= 4x tile = 64 MiB.
        return 16 * 1024 * 1024, 96 * 1024 * 1024
    # v7x: 64 MiB VMEM per TC.  Peak ~= 4x tile = 32 MiB, limit 48 MiB.
    return 8 * 1024 * 1024, 48 * 1024 * 1024


def attention_forward(x, weight, bias=None, mask=None, *,
                      batch_tile=None, stream_x_bf16=False):
    """x: (B, S, F), weight: (F, 1) or (F,), bias: (S,) or None, mask: (B, S) or None.

    stream_x_bf16: store/stream x as bf16 (halves HBM read bytes); math stays
    f32 in-kernel.  Not bit-faithful to the f32 torch reference.
    """
    B, S, F = x.shape
    out_dtype = x.dtype
    if mask is None:
        mask = jnp.ones((B, S), dtype=jnp.float32)
    if bias is None:
        bias = jnp.zeros((S,), dtype=jnp.float32)
    w2d = weight.reshape(1, F).astype(jnp.float32)
    b2d = bias.reshape(1, S).astype(jnp.float32)
    mask = mask.astype(jnp.float32)

    x_stream = x.astype(jnp.bfloat16) if stream_x_bf16 else x

    # ---- choose the batch tile (largest that fits the VMEM budget) --------
    x_tile_budget, vmem_limit = _vmem_config()
    if batch_tile is None:
        bytes_per_row = S * F * jnp.dtype(x_stream.dtype).itemsize
        batch_tile = max(1, x_tile_budget // bytes_per_row)
    tb = int(batch_tile)
    if tb < B:
        # Partial batch tiles: second-to-last block dims (mask/out) must be a
        # multiple of 8 unless they span the full array.
        tb = max(8, (tb // 8) * 8)
    if tb >= B:
        tb = B
    grid = (pl.cdiv(B, tb),)

    # TODO(synk): for F not a multiple of 128 a lane-dense (padded-to-128)
    # output slab would avoid masked vst.msk partial stores; the output is
    # S x smaller than x, so the win is modest and skipped here.
    # TODO(synk): if batch_tile is forced small (huge S*F per row), add
    # pipeline_mode=pl.Buffered(3) on the x BlockSpec to hide DMA issue latency.
    return pl.pallas_call(
        attention_kernel,
        out_shape=jax.ShapeDtypeStruct((B, F), out_dtype),
        grid_spec=pltpu.PrefetchScalarGridSpec(
            num_scalar_prefetch=0,
            grid=grid,
            in_specs=[
                pl.BlockSpec((1, F), lambda i: (0, 0)),         # weight (resident)
                pl.BlockSpec((1, S), lambda i: (0, 0)),         # bias   (resident)
                pl.BlockSpec((tb, S, F), lambda i: (i, 0, 0)),  # x tile
                pl.BlockSpec((tb, S), lambda i: (i, 0)),        # mask tile
            ],
            out_specs=pl.BlockSpec((tb, F), lambda i: (i, 0)),
        ),
        compiler_params=pltpu.CompilerParams(
            dimension_semantics=("parallel",),   # shard batch tiles across TCs (v7x)
            vmem_limit_bytes=vmem_limit,         # generation-aware scoped VMEM
        ),
    )(w2d, b2d, x_stream, mask)


def reference_forward(x, weight, bias, mask=None):
    B, S, F = x.shape
    eij = (x.reshape(-1, F) @ weight.reshape(F, 1)).reshape(-1, S)
    eij = eij + bias[None, :]
    eij = jnp.tanh(eij)
    a = jnp.exp(eij)
    if mask is not None:
        a = a * mask
    a = a / jnp.sum(a, axis=1, keepdims=True) + 1e-10
    return jnp.sum(x * a[:, :, None], axis=1)


if __name__ == "__main__":
    key = jax.random.PRNGKey(0)
    kx, kw, km = jax.random.split(key, 3)

    B, S, F = 16, 8, 32          # batch, step_dim, feature_dim

    x = jax.random.normal(kx, (B, S, F), dtype=jnp.float32)

    # xavier_uniform_ on a (F, 1) tensor: fan_in=1, fan_out=F
    bound = float(np.sqrt(6.0 / (F + 1)))
    weight = jax.random.uniform(kw, (F, 1), dtype=jnp.float32,
                                minval=-bound, maxval=bound)
    bias = jnp.zeros((S,), dtype=jnp.float32)   # nn.init default zeros

    # deterministic binary mask; guarantee no all-zero row (see precondition)
    mask = (jax.random.uniform(km, (B, S)) > 0.3).astype(jnp.float32)
    mask = mask.at[:, 0].set(1.0)

    # batch_tile=8 -> grid of 2 blocks, exercises the pipelined multi-tile path
    out = attention_forward(x, weight, bias, mask, batch_tile=8)
    out = jax.block_until_ready(out)
    ref = reference_forward(x, weight, bias, mask)
    assert out.shape == (B, F)
    # Exact divide now -> only f32 reduction-order noise remains.
    np.testing.assert_allclose(np.asarray(out), np.asarray(ref),
                               rtol=1e-4, atol=1e-5)

    # mask=None / auto-tile (generation-aware) path
    out_nm = attention_forward(x, weight, bias, None)
    out_nm = jax.block_until_ready(out_nm)
    ref_nm = reference_forward(x, weight, bias, None)
    np.testing.assert_allclose(np.asarray(out_nm), np.asarray(ref_nm),
                               rtol=1e-4, atol=1e-5)

    # bf16-streamed x path: compare against a reference computed on the same
    # bf16-rounded x, so only in-kernel (f32) reduction-order noise remains.
    out_bf = attention_forward(x, weight, bias, mask, batch_tile=8,
                               stream_x_bf16=True)
    out_bf = jax.block_until_ready(out_bf)
    x_bf = x.astype(jnp.bfloat16).astype(jnp.float32)
    ref_bf = reference_forward(x_bf, weight, bias, mask)
    np.testing.assert_allclose(np.asarray(out_bf), np.asarray(ref_bf),
                               rtol=1e-4, atol=1e-5)

    print("KERNEL_OK")
</pallas_src>

<mosaic_0001>
module attributes {stable_mosaic.version = 11 : i64} {
  func.func @attention_kernel(%arg0: i32, %arg1: memref<1x32xf32, #tpu.memory_space<vmem>>, %arg2: memref<1x8xf32, #tpu.memory_space<vmem>>, %arg3: memref<8x8x32xf32, #tpu.memory_space<vmem>>, %arg4: memref<8x8xf32, #tpu.memory_space<vmem>>, %arg5: memref<8x32xf32, #tpu.memory_space<vmem>>) attributes {dimension_semantics = [#tpu.dimension_semantics<parallel>], iteration_bounds = array<i64: 2>, scalar_prefetch = 0 : i64, scratch_operands = 0 : i64, tpu.core_type = #tpu.core_type<tc>, window_params = [{pipeline_mode = #tpu.pipeline_mode<synchronous>, transform_indices = @transform_0, window_bounds = array<i64: 1, 32>}, {pipeline_mode = #tpu.pipeline_mode<synchronous>, transform_indices = @transform_1, window_bounds = array<i64: 1, 8>}, {transform_indices = @transform_2, window_bounds = array<i64: 8, 8, 32>}, {transform_indices = @transform_3, window_bounds = array<i64: 8, 8>}, {transform_indices = @transform_4, window_bounds = array<i64: 8, 32>}]} {
    %c0 = arith.constant 0 : index
    %c0_0 = arith.constant 0 : index
    %c0_1 = arith.constant 0 : index
    %0 = vector.load %arg3[%c0, %c0_0, %c0_1] : memref<8x8x32xf32, #tpu.memory_space<vmem>>, vector<8x8x32xf32>
    %c0_2 = arith.constant 0 : index
    %c0_3 = arith.constant 0 : index
    %1 = vector.load %arg1[%c0_2, %c0_3] : memref<1x32xf32, #tpu.memory_space<vmem>>, vector<1x32xf32>
    %c0_4 = arith.constant 0 : index
    %c0_5 = arith.constant 0 : index
    %2 = vector.load %arg2[%c0_4, %c0_5] : memref<1x8xf32, #tpu.memory_space<vmem>>, vector<1x8xf32>
    %c0_6 = arith.constant 0 : index
    %c0_7 = arith.constant 0 : index
    %3 = vector.load %arg4[%c0_6, %c0_7] : memref<8x8xf32, #tpu.memory_space<vmem>>, vector<8x8xf32>
    %4 = vector.shape_cast %1 : vector<1x32xf32> to vector<1x1x32xf32>
    %5 = vector.broadcast %4 : vector<1x1x32xf32> to vector<8x8x32xf32>
    %6 = arith.mulf %0, %5 : vector<8x8x32xf32>
    %cst = arith.constant dense<0.000000e+00> : vector<8x8xf32>
    %7 = vector.multi_reduction <add>, %6, %cst [2] : vector<8x8x32xf32> to vector<8x8xf32>
    %8 = vector.broadcast %2 : vector<1x8xf32> to vector<8x8xf32>
    %9 = arith.addf %7, %8 : vector<8x8xf32>
    %10 = math.tanh %9 : vector<8x8xf32>
    %11 = math.exp %10 : vector<8x8xf32>
    %12 = arith.mulf %11, %3 : vector<8x8xf32>
    %cst_8 = arith.constant dense<0.000000e+00> : vector<8xf32>
    %13 = vector.multi_reduction <add>, %12, %cst_8 [1] : vector<8x8xf32> to vector<8xf32>
    %14 = vector.shape_cast %13 : vector<8xf32> to vector<8x1xf32>
    %15 = vector.broadcast %14 : vector<8x1xf32> to vector<8x8xf32>
    %16 = arith.divf %12, %15 : vector<8x8xf32>
    %cst_9 = arith.constant 1.000000e-10 : f32
    %17 = vector.broadcast %cst_9 : f32 to vector<8x8xf32>
    %18 = arith.addf %16, %17 : vector<8x8xf32>
    %19 = vector.shape_cast %18 : vector<8x8xf32> to vector<8x8x1xf32>
    %20 = vector.broadcast %19 : vector<8x8x1xf32> to vector<8x8x32xf32>
    %21 = arith.mulf %0, %20 : vector<8x8x32xf32>
    %cst_10 = arith.constant dense<0.000000e+00> : vector<8x32xf32>
    %22 = vector.multi_reduction <add>, %21, %cst_10 [1] : vector<8x8x32xf32> to vector<8x32xf32>
    %c0_11 = arith.constant 0 : index
    %c0_12 = arith.constant 0 : index
    %23 = vector.load %arg5[%c0_11, %c0_12] : memref<8x32xf32, #tpu.memory_space<vmem>>, vector<8x32xf32>
    tpu.vector_store %arg5[%c0_11, %c0_12], %22 {strides = array<i32>} : memref<8x32xf32, #tpu.memory_space<vmem>>, vector<8x32xf32>,
    return
  }
  func.func @transform_0(%arg0: i32) -> (i32, i32) {
    %c0_i32 = arith.constant 0 : i32
    %c0_i32_0 = arith.constant 0 : i32
    %c0_i32_1 = arith.constant 0 : i32
    return %c0_i32, %c0_i32_0 : i32, i32
  }
  func.func @transform_1(%arg0: i32) -> (i32, i32) {
    %c0_i32 = arith.constant 0 : i32
    %c0_i32_0 = arith.constant 0 : i32
    %c0_i32_1 = arith.constant 0 : i32
    return %c0_i32, %c0_i32_0 : i32, i32
  }
  func.func @transform_2(%arg0: i32) -> (i32, i32, i32) {
    %c0_i32 = arith.constant 0 : i32
    %c0_i32_0 = arith.constant 0 : i32
    %c0_i32_1 = arith.constant 0 : i32
    return %arg0, %c0_i32, %c0_i32_0 : i32, i32, i32
  }
  func.func @transform_3(%arg0: i32) -> (i32, i32) {
    %c0_i32 = arith.constant 0 : i32
    %c0_i32_0 = arith.constant 0 : i32
    return %arg0, %c0_i32 : i32, i32
  }
  func.func @transform_4(%arg0: i32) -> (i32, i32) {
    %c0_i32 = arith.constant 0 : i32
    %c0_i32_0 = arith.constant 0 : i32
    return %arg0, %c0_i32 : i32, i32
  }
}

</mosaic_0001>

<bundles_post_ra>
// kernel: tpu_custom_call.1
= control target key start
LH: loop header
LB: loop body
LE: loop exit
PB: predicated region body
PF: predicated region fallthrough
CT: control target
= control target key end

     0   :  { %9 = vsyncpa [#allocation3], 0  ;;  %s1299_s0 = inlined_call_operand.vmem [shape: f32[1,32], index: 0, kind: input, shape index: {}]   ;;  %s1300_s1 = inlined_call_operand.vmem [shape: f32[1,8], index: 1, kind: input, shape index: {}]   ;;  %s1301_s2 = inlined_call_operand.hbm [shape: f32[16,8,32], index: 2, kind: input, shape index: {}]   ;;  %s1302_s3 = inlined_call_operand.vmem [shape: f32[16,8], index: 3, kind: input, shape index: {}]   ;;  %s1303_s4 = inlined_call_operand.hbm [shape: f32[16,32], index: 4, kind: output, shape index: {}]  }
   0x1   :  { %11 = vsyncpa [#allocation3 + $0x1], 0 }
   0x2   :  { %12 = vsyncpa [#allocation4], 0 }
   0x3   :  { %14 = vsyncpa [#allocation4 + $0x1], 0  ;;  %s1005_s15 = smov 0   ;;  %s1007_s16 = smov 0  }
   0x4   :  { %s1009_s17 = smov 0   ;;  %s1011_s18 = smov 0  }
   0x5 LB: > { %s1026_s19 = sadd.s32 4294967295, %s973_s18   ;;  %s765_s20 = sadd.s32 4294967294, %s973_s18   ;;  %s973_s18 = sphi %s1011_s18, %s1318_s18   ;;  %s969_s17 = sphi %s1009_s17, %s1317_s17   ;;  %s965_s16 = sphi %s1007_s16, %s1316_s16   ;;  %s961_s15 = sphi %s1005_s15, %s1315_s15  }
   0x6   : > { %s1030_s21 = sadd.s32 1, %s973_s18   ;;  %s69_s22 = sadd.s32 1, %s969_s17 }
   0x7   : > { %s66_s23 = ssub.s32 %s973_s18, %s1030_s21  ;;  %p76_p0 = scmp.ne.s32.totalorder %s969_s17, %s965_s16 }
   0x8   : > { %p67_p1 = scmp.eq.s32.totalorder %s66_s23, 0  ;;  %p77_p2 = scmp.eq.s32.totalorder %s973_s18, 0 }
   0x9   : > { %p82_p3 = scmp.ne.s32.totalorder %s965_s16, %s961_s15  ;;  %p83_p4 = scmp.eq.s32.totalorder %s1026_s19, 0 }
   0xa   : > { %s1042_s24 = scalar_select %p67_p1, %s969_s17, %s69_s22  }
   0xb   : > { %p1044_p5 = por %p77_p2, %p76_p0  ;;  %p1048_p6 = por %p83_p4, %p82_p3 }
   0xc   : > { %p132_p7 = scmp.eq.s32.totalorder %s1026_s19, 1  ;;  %p138_p8 = scmp.eq.s32.totalorder %s765_s20, 1 }
   0xd   : > { %s1307_s26 = scalar_select %p1048_p6, 1, 0 }
   0xe   : > { %p794_p10 = scmp.lt.s32.totalorder %s973_s18, 2  ;;  %p1055_p11 = por %p132_p7, %p76_p0 }
   0xf   : > { %p1059_p12 = por %p138_p8, %p82_p3  ;;  %s164_s29 = sand.u32 1, %s969_s17  }
  0x10   : > { %s1308_s27 = scalar_select %p1055_p11, 1, 0 }
  0x11   : > { %s1309_s28 = scalar_select %p1059_p12, 1, 0 }
  0x12   : > { %s781_s30 = sshll.u32 %s973_s18, 10  ;;  %s768_s5 = sshll.u32 %s164_s29, 6 }
  0x13   : > { %s1068_s8 = scalar_lea.hbm %s1301_s2, %s781_s30  ;;  %s168_s9 = scalar_lea.vmem [#allocation2], %s768_s5 }
  0x14   : > { %s175_s10 = sshll.u32 %s168_s9, 4  ;;  %p1072_p13 = pnand %p794_p10, %p1044_p5  ;;  %s1076_s10 = int_to_ptr.vmem [resolvable:$true] %s175_s10 }
  0x15   : > { %s1078_s12 = scalar_lea.sflag [#allocation3], %s164_s29  ;;  %s881_s13 = scalar_lea.hbm %s1068_s8, 1024 }
  0x16   : > { %p882_p0 = scmp.ne.s32.totalorder %s1068_s8, %s881_s13  ;;  %p883_p1 = pneg %p1072_p13 }
  0x17   : > { %s886_s22 = scalar_lea.hbm %s1301_s2, 2048  ;;  %p887_p4 = scmp.lt.s32.totalorder %s1068_s8, %s1301_s2 }
  0x18   : > { %p884_p2 = pnand %p883_p1, %p882_p0  ;;  %p888_p5 = scmp.lt.s32.totalorder %s886_s22, %s881_s13 }
  0x1a   : > { %p885_p3 = pneg %p884_p2  ;;  %p889_p7 = por %p888_p5, %p887_p4 }
  0x1c   : > { %p890_p8 = pnand %p889_p7, %p885_p3 }
  0x1e   : > { %893 = shalt.err (!%p890_p8)
}
  0x1f   : > { %s894_s29 = scalar_lea.vmem %s1076_s10, 1024  ;;  %s975_s30 = smov [#allocation2]  }
  0x20   : > { %p895_p10 = scmp.ne.s32.totalorder %s1076_s10, %s894_s29  ;;  %s899_s5 = sshll.u32 %s975_s30, 4  ;;  %s900_s5 = int_to_ptr.vmem [resolvable:$false] %s899_s5 }
  0x21   : > { %s901_s6 = scalar_lea.vmem %s900_s5, 2048  ;;  %p902_p2 = scmp.lt.s32.totalorder %s1076_s10, %s900_s5 }
  0x22   : > { %p897_p9 = pnand %p895_p10, %p883_p1  ;;  %p903_p12 = scmp.lt.s32.totalorder %s901_s6, %s894_s29 }
  0x24   : > { %p898_p0 = pneg %p897_p9  ;;  %p904_p11 = por %p903_p12, %p902_p2 }
  0x26   : > { %p905_p6 = pnand %p904_p11, %p898_p0 }
  0x28   : > { %908 = shalt.err (!%p905_p6)
}
  0x29   : > { %s976_s7 = smov 128   ;;  %s977_s9 = smov 8  }
  0x2a   : > { %789 = dma.hbm_to_vmem [thread:$0]  (!%p1072_p13), %s1068_s8, 1024, %s1076_s10, %s1078_s12, %s976_s7, %s976_s7, %s977_s9  }
  0x2b   : > { %p771_p9 = scmp.ge.s32.totalorder %s973_s18, 1  ;;  %p190_p1 = scmp.lt.s32.totalorder %s973_s18, 3 }
  0x2d   : > { %p191_p3 = pnand %p771_p9, %p190_p1 }
  0x2e   : > { %s1102_s13 = sand.u32 (!%p191_p3), 1, %s965_s16   ;;  %p1311_p6 = scmp.ne.s32.totalorder (!%p191_p3), %s1307_s26, 0 }
  0x2f   : > { %194 = sbr.rel (%p191_p3) target bundleno = 727 (0x2d7), region = 36  ;;  %s772_s14 = sshll.u32 (!%p191_p3), %s1102_s13, 6 }
  0x30   : > { %s197_s20 = scalar_lea.sflag (!%p191_p3), [#allocation3], %s1102_s13  ;;  %s200_s22 = scalar_lea.vmem (!%p191_p3), [#allocation2], %s772_s14 }
  0x34   : > { %952 = dma.done.wait (%p1311_p6), %s197_s20, 1024  }
  0x35   : > { %954 = vsyncadd (%p1311_p6), %s197_s20, 4294966272  ;;  %v1110_v0 = vld [vmem:[%s200_s22] sm:$0xff]  ;;  %vm259_vm0 = vcmask 261120   ;;  %v1115_v2 = vld [vmem:[%s200_s22 + $0x10] sm:$0xff]  ;;  %p230_p11 = scmp.lt.s32.totalorder %s1026_s19, 1  ;;  %v326_v25 = vlaneseq  ;;  %v978_v45 = vmov 0  }
  0x36   : > { %v775_v1 = vld [vmem:[%s1299_s0] ss:$0 sm:$0xff]  ;;  %v1119_v5 = vld [vmem:[%s200_s22 + $0x8] sm:$0xff]  ;;  %v1121_v6 = vld [vmem:[%s200_s22 + $0x18] sm:$0xff]  ;;  %832 = vset.pattern.permute.xlu0 %v978_v45  ;;  %831 = vset.pattern.permute.xlu1 %v978_v45  ;;  %vm464_vm1 = vcmask 1041409   ;;  %vm466_vm2 = vcmask 1042434  }
  0x37   : > { %v251_v3 = vmul.f32 %v775_v1, %v1110_v0  ;;  %v253_v4 = vmul.f32 %v775_v1, %v1115_v2  ;;  %v252_v7 = vmul.f32 %v775_v1, %v1119_v5  ;;  %v254_v8 = vmul.f32 %v775_v1, %v1121_v6  ;;  %v1125_v9 = vld [vmem:[%s200_s22 + $0x20] sm:$0xff]  ;;  %v1127_v10 = vld [vmem:[%s200_s22 + $0x28] sm:$0xff]  ;;  %v1135_v17 = vld [vmem:[%s200_s22 + $0x30] sm:$0xff]  ;;  %s231_s26 = scalar_select %p230_p11, %s1026_s19, 1 }
  0x38   : > { %v255_v15 = vmul.f32 %v775_v1, %v1125_v9  ;;  %v256_v16 = vmul.f32 %v775_v1, %v1127_v10  ;;  %v1137_v18 = vld [vmem:[%s200_s22 + $0x38] sm:$0xff]  ;;  %v257_v21 = vmul.f32 %v775_v1, %v1135_v17  ;;  %v1148_v26 = vshrl.u32 %v326_v25, 7  ;;  %v776_v34 = vld [vmem:[%s1300_s1] ss:$0 sm:$0xff]  ;;  %s773_s5 = sshll.u32 %s1102_s13, 3  ;;  %s778_s6 = sshll.u32 %s1026_s19, 7 }
  0x39   : > { %v260_v11 = vsel %vm259_vm0, %v251_v3, 0.0  ;;  %v266_v12 = vsel %vm259_vm0, %v253_v4, 0.0  ;;  %v263_v13 = vsel %vm259_vm0, %v252_v7, 0.0  ;;  %v269_v14 = vsel %vm259_vm0, %v254_v8, 0.0  ;;  %s774_s11 = sshll.u32 %s231_s26, 3  ;;  %s228_s7 = scalar_lea.vmem [#allocation5], %s773_s5 }
  0x3a   : > { %261 = vadd.xlane.f32.xlu0 %v260_v11  ;;  %267 = vadd.xlane.f32.xlu1 %v266_v12  ;;  %v272_v19 = vsel %vm259_vm0, %v255_v15, 0.0  ;;  %v275_v20 = vsel %vm259_vm0, %v256_v16, 0.0  ;;  %v258_v22 = vmul.f32 %v775_v1, %v1137_v18  ;;  %v278_v23 = vsel %vm259_vm0, %v257_v21, 0.0  ;;  %s233_s25 = scalar_lea.vmem %s1302_s3, %s774_s11  ;;  %s683_s9 = sshll.u32 %s228_s7, 4  ;;  %s684_s9 = int_to_ptr.vmem [resolvable:$true] %s683_s9 }
  0x3b   : > { %v328_v27 = vsub.s32 0, %v1148_v26  ;;  %v244_v28 = vld [vmem:[%s233_s25] sm:$0xff]  ;;  %v335_v30 = vsub.s32 1, %v1148_v26  ;;  %v342_v32 = vsub.s32 2, %v1148_v26  ;;  %v349_v33 = vsub.s32 3, %v1148_v26  ;;  %s1260_s22 = scalar_lea.hbm %s1303_s4, %s778_s6  ;;  %s670_s19 = scalar_lea.sflag [#allocation4], %s1102_s13 }
  0x3c   : > { %v281_v24 = vsel %vm259_vm0, %v258_v22, 0.0  ;;  %v356_v36 = vsub.s32 4, %v1148_v26  ;;  %v363_v38 = vsub.s32 5, %v1148_v26  ;;  %v370_v40 = vsub.s32 6, %v1148_v26  ;;  %s909_s8 = scalar_lea.vmem %s684_s9, 128  ;;  %p1312_p13 = scmp.ne.s32.totalorder %s1308_s27, 0 }
  0x3d   : > { %v329_v29 = vrot.slane %v244_v28, %v328_v27  ;;  %v336_v31 = vrot.slane %v244_v28, %v335_v30  ;;  %v343_v35 = vrot.slane %v244_v28, %v342_v32  ;;  %v350_v37 = vrot.slane %v244_v28, %v349_v33  ;;  %p910_p12 = scmp.ne.s32.totalorder %s684_s9, %s909_s8  ;;  %s979_s10 = smov [#allocation5]  }
  0x3e   : > { %264 = vadd.xlane.f32.xlu0 %v263_v13  ;;  %270 = vadd.xlane.f32.xlu1 %v269_v14  ;;  %v357_v39 = vrot.slane %v244_v28, %v356_v36  ;;  %v364_v41 = vrot.slane %v244_v28, %v363_v38  ;;  %v377_v42 = vsub.s32 7, %v1148_v26  ;;  %v371_v43 = vrot.slane %v244_v28, %v370_v40  ;;  %s913_s26 = sshll.u32 %s979_s10, 4  ;;  %s914_s26 = int_to_ptr.vmem [resolvable:$false] %s913_s26 }
  0x3f   : > { %vm468_vm3 = vcmask 1043459   ;;  %vm470_vm4 = vcmask 1044484   ;;  %vm472_vm5 = vcmask 1045509   ;;  %vm474_vm6 = vcmask 1046534   ;;  %p911_p4 = pnand %p910_p12, %p1312_p13  ;;  %s915_s11 = scalar_lea.vmem %s914_s26, 256 }
  0x40   : > { %v378_v44 = vrot.slane %v244_v28, %v377_v42  ;;  %vm476_vm7 = vcmask 1047559   ;;  %vm479_vm8 = vcmask 64512   ;;  %p916_p7 = scmp.lt.s32.totalorder %s684_s9, %s914_s26  ;;  %p917_p8 = scmp.lt.s32.totalorder %s915_s11, %s909_s8 }
  0x41   : > { %p912_p5 = pneg %p911_p4 }
  0x42   : > { %273 = vadd.xlane.f32.xlu0 %v272_v19  ;;  %276 = vadd.xlane.f32.xlu1 %v275_v20  ;;  %p918_p10 = por %p917_p8, %p916_p7 }
  0x44   : > { %p919_p0 = pnand %p918_p10, %p912_p5 }
  0x46   : > { %279 = vadd.xlane.f32.xlu0 %v278_v23  ;;  %282 = vadd.xlane.f32.xlu1 %v281_v24 }
  0x57   : > { %331 = vbcast.lane.b32.xlu1 %v329_v29, 256 }
  0x5b   : > { %338 = vbcast.lane.b32.xlu1 %v336_v31, 256 }
  0x5c   : > { %290 = vbcast.lane.b32.xlu0 %v776_v34, 256 }
  0x5f   : > { %345 = vbcast.lane.b32.xlu1 %v343_v35, 256 }
  0x60   : > { %352 = vbcast.lane.b32.xlu0 %v350_v37, 256 }
  0x63   : > { %359 = vbcast.lane.b32.xlu1 %v357_v39, 256 }
  0x64   : > { %366 = vbcast.lane.b32.xlu0 %v364_v41, 256 }
  0x67   : > { %373 = vbcast.lane.b32.xlu1 %v371_v43, 256 }
  0x68   : > { %380 = vbcast.lane.b32.xlu0 %v378_v44, 256 }
  0xc3   : > { %v262_v46 = vpop.xlane.xlu0 %261  ;;  %v268_v47 = vpop.xlane.xlu1 %267 }
  0xc7   : > { %v265_v48 = vpop.xlane.xlu0 %264  ;;  %v271_v50 = vpop.xlane.xlu1 %270 }
  0xcb   : > { %v274_v49 = vpop.xlane.xlu0 %273  ;;  %v277_v52 = vpop.xlane.xlu1 %276 }
  0xcf   : > { %v280_v51 = vpop.xlane.xlu0 %279  ;;  %v283_v61 = vpop.xlane.xlu1 %282 }
  0xd3   : > { %v291_v53 = vpop.permute.xlu0 %290  ;;  %v332_v63 = vpop.permute.xlu1 %331 }
  0xd4   : > { %v293_v54 = vadd.f32 %v291_v53, %v262_v46  ;;  %v294_v55 = vadd.f32 %v291_v53, %v265_v48  ;;  %v295_v56 = vadd.f32 %v291_v53, %v268_v47  ;;  %v296_v57 = vadd.f32 %v291_v53, %v271_v50 }
  0xd5   : > { %v297_v58 = vadd.f32 %v291_v53, %v274_v49  ;;  %v298_v59 = vadd.f32 %v291_v53, %v277_v52  ;;  %v299_v60 = vadd.f32 %v291_v53, %v280_v51  ;;  %v300_v62 = vadd.f32 %v291_v53, %v283_v61 }
  0xd6   : > { %833 = vtanh.f32 %v293_v54 }
  0xd7   : > { %835 = vtanh.f32 %v294_v55  ;;  %v339_v15 = vpop.permute.xlu1 %338  ;;  %v353_v41 = vpop.permute.xlu0 %352 }
  0xd8   : > { %837 = vtanh.f32 %v295_v56 }
  0xd9   : > { %839 = vtanh.f32 %v296_v57  ;;  %v431_v57 = vand.u32 127, %v326_v25 }
  0xda   : > { %841 = vtanh.f32 %v297_v58 }
  0xdb   : > { %843 = vtanh.f32 %v298_v59  ;;  %v346_v24 = vpop.permute.xlu1 %345  ;;  %v367_v49 = vpop.permute.xlu0 %366  ;;  %v434_v59 = vsub.s32 %v431_v57, %v1148_v26 }
  0xdc   : > { %845 = vtanh.f32 %v299_v60 }
  0xdd   : > { %847 = vtanh.f32 %v300_v62 }
  0xdf   : > { %v360_v35 = vpop.permute.xlu1 %359  ;;  %v381_v55 = vpop.permute.xlu0 %380 }
  0xe3   : > { %v834_v1 = vpop.eup %833  ;;  %v374_v48 = vpop.permute.xlu1 %373 }
  0xe4   : > { %v836_v3 = vpop.eup %835  ;;  %v309_v4 = vmul.f32 1.442695, %v834_v1 }
  0xe5   : > { %v838_v7 = vpop.eup %837  ;;  %v311_v8 = vmul.f32 1.442695, %v836_v3 }
  0xe6   : > { %v840_v11 = vpop.eup %839  ;;  %849 = vpow2.f32 %v309_v4  ;;  %v313_v12 = vmul.f32 1.442695, %v838_v7 }
  0xe7   : > { %v842_v13 = vpop.eup %841  ;;  %851 = vpow2.f32 %v311_v8  ;;  %v315_v16 = vmul.f32 1.442695, %v840_v11 }
  0xe8   : > { %v844_v14 = vpop.eup %843  ;;  %853 = vpow2.f32 %v313_v12  ;;  %v317_v19 = vmul.f32 1.442695, %v842_v13 }
  0xe9   : > { %v846_v20 = vpop.eup %845  ;;  %v319_v22 = vmul.f32 1.442695, %v844_v14 }
  0xea   : > { %855 = vpow2.f32 %v317_v19  ;;  %v321_v21 = vmul.f32 1.442695, %v846_v20  ;;  %v848_v23 = vpop.eup %847 }
  0xeb   : > { %857 = vpow2.f32 %v315_v16  ;;  %v323_v28 = vmul.f32 1.442695, %v848_v23 }
  0xec   : > { %859 = vpow2.f32 %v321_v21 }
  0xed   : > { %861 = vpow2.f32 %v319_v22 }
  0xee   : > { %863 = vpow2.f32 %v323_v28 }
  0xf3   : > { %v850_v29 = vpop.eup %849 }
  0xf4   : > { %v852_v31 = vpop.eup %851  ;;  %v1180_v34 = vmul.f32 %v850_v29, %v332_v63 }
  0xf5   : > { %v854_v37 = vpop.eup %853  ;;  %v1182_v39 = vmul.f32 %v852_v31, %v339_v15 }
  0xf6   : > { %407 = vperm.xlu1 %831, %v1180_v34   ;;  %v1186_v44 = vmul.f32 %v854_v37, %v346_v24 }
  0xf7   : > { %v856_v43 = vpop.eup %855  ;;  %410 = vperm.xlu0 %832, %v1182_v39  }
  0xf8   : > { %v858_v45 = vpop.eup %857  ;;  %v1188_v46 = vmul.f32 %v856_v43, %v360_v35 }
  0xf9   : > { %v860_v47 = vpop.eup %859  ;;  %v1192_v50 = vmul.f32 %v858_v45, %v353_v41 }
  0xfa   : > { %413 = vperm.xlu1 %831, %v1186_v44   ;;  %v862_v51 = vpop.eup %861  ;;  %v1194_v52 = vmul.f32 %v860_v47, %v374_v48 }
  0xfb   : > { %419 = vperm.xlu0 %832, %v1188_v46   ;;  %v1198_v53 = vmul.f32 %v862_v51, %v367_v49  ;;  %v864_v54 = vpop.eup %863 }
  0xfc   : > { %v397_v56 = vmul.f32 %v864_v54, %v381_v55 }
  0xfe   : > { %416 = vperm.xlu1 %831, %v1192_v50  }
  0xff   : > { %425 = vperm.xlu0 %832, %v1194_v52  }
 0x102   : > { %422 = vperm.xlu1 %831, %v1198_v53  }
 0x106   : > { %428 = vperm.xlu1 %831, %v397_v56  }
 0x171   : > { %v408_v58 = vpop.permute.xlu1 %407 }
 0x172   : > { %v411_v60 = vpop.permute.xlu0 %410  ;;  %v435_v62 = vrot.slane %v408_v58, %v434_v59 }
 0x173   : > { %v439_v63 = vrot.slane %v411_v60, %v434_v59 }
 0x175   : > { %v414_v61 = vpop.permute.xlu1 %413  ;;  %v465_v7 = vsel %vm464_vm1, %v439_v63, %v435_v62 }
 0x176   : > { %v443_v1 = vrot.slane %v414_v61, %v434_v59  ;;  %v420_v3 = vpop.permute.xlu0 %419 }
 0x177   : > { %v451_v12 = vrot.slane %v420_v3, %v434_v59 }
 0x178   : > { %v467_v11 = vsel %vm466_vm2, %v443_v1, %v465_v7 }
 0x179   : > { %v417_v4 = vpop.permute.xlu1 %416 }
 0x17a   : > { %v447_v8 = vrot.slane %v417_v4, %v434_v59  ;;  %v426_v14 = vpop.permute.xlu0 %425 }
 0x17b   : > { %v459_v20 = vrot.slane %v426_v14, %v434_v59 }
 0x17c   : > { %v469_v25 = vsel %vm468_vm3, %v447_v8, %v467_v11 }
 0x17d   : > { %v423_v13 = vpop.permute.xlu1 %422  ;;  %v471_v16 = vsel %vm470_vm4, %v451_v12, %v469_v25 }
 0x17e   : > { %v455_v15 = vrot.slane %v423_v13, %v434_v59 }
 0x180   : > { %v473_v19 = vsel %vm472_vm5, %v455_v15, %v471_v16 }
 0x181   : > { %v429_v21 = vpop.permute.xlu1 %428  ;;  %v475_v23 = vsel %vm474_vm6, %v459_v20, %v473_v19 }
 0x182   : > { %v463_v22 = vrot.slane %v429_v21, %v434_v59 }
 0x184   : > { %v477_v24 = vsel %vm476_vm7, %v463_v22, %v475_v23 }
 0x185   : > { %v480_v28 = vsel %vm479_vm8, %v477_v24, 0.0 }
 0x186   : > { %481 = vadd.xlane.f32.xlu0 %v480_v28 }
 0x20f   : > { %v482_v29 = vpop.xlane.xlu0 %481 }
 0x210   : > { %v515_v31 = vrot.slane %v482_v29, %v377_v42  ;;  %v487_v35 = vrot.slane %v482_v29, %v328_v27  ;;  %v491_v37 = vrot.slane %v482_v29, %v335_v30  ;;  %v495_v41 = vrot.slane %v482_v29, %v342_v32 }
 0x211   : > { %v499_v43 = vrot.slane %v482_v29, %v349_v33  ;;  %v503_v42 = vrot.slane %v482_v29, %v356_v36  ;;  %v507_v27 = vrot.slane %v482_v29, %v363_v38  ;;  %v511_v33 = vrot.slane %v482_v29, %v370_v40 }
 0x212   : > { %865 = vrcp.f32 %v515_v31 }
 0x213   : > { %867 = vrcp.f32 %v487_v35 }
 0x214   : > { %869 = vrcp.f32 %v491_v37 }
 0x215   : > { %871 = vrcp.f32 %v495_v41 }
 0x216   : > { %873 = vrcp.f32 %v499_v43 }
 0x217   : > { %875 = vrcp.f32 %v503_v42 }
 0x218   : > { %877 = vrcp.f32 %v507_v27 }
 0x219   : > { %879 = vrcp.f32 %v511_v33 }
 0x21f   : > { %v866_v45 = vpop.eup %865 }
 0x220   : > { %v868_v30 = vpop.eup %867  ;;  %v539_v47 = vmul.f32 %v866_v45, %v397_v56 }
 0x221   : > { %v870_v48 = vpop.eup %869  ;;  %v525_v49 = vmul.f32 %v868_v30, %v1180_v34 }
 0x222   : > { %v547_v32 = vadd.f32 1e-10, %v539_v47  ;;  %v527_v54 = vmul.f32 %v870_v48, %v1182_v39  ;;  %v872_v55 = vpop.eup %871 }
 0x223   : > { %v540_v51 = vadd.f32 1e-10, %v525_v49  ;;  %v529_v57 = vmul.f32 %v872_v55, %v1186_v44  ;;  %v874_v38 = vpop.eup %873 }
 0x224   : > { %585 = vperm.xlu0 %832, %v547_v32   ;;  %v541_v36 = vadd.f32 1e-10, %v527_v54  ;;  %v531_v34 = vmul.f32 %v874_v38, %v1192_v50  ;;  %v876_v58 = vpop.eup %875 }
 0x225   : > { %550 = vperm.xlu1 %831, %v540_v51   ;;  %v542_v56 = vadd.f32 1e-10, %v529_v57  ;;  %v533_v39 = vmul.f32 %v876_v58, %v1188_v46  ;;  %v878_v60 = vpop.eup %877 }
 0x226   : > { %v543_v59 = vadd.f32 1e-10, %v531_v34  ;;  %v535_v40 = vmul.f32 %v878_v60, %v1198_v53  ;;  %v880_v61 = vpop.eup %879 }
 0x227   : > { %v544_v26 = vadd.f32 1e-10, %v533_v39  ;;  %v537_v44 = vmul.f32 %v880_v61, %v1194_v52 }
 0x228   : > { %v545_v62 = vadd.f32 1e-10, %v535_v40 }
 0x229   : > { %555 = vperm.xlu1 %831, %v541_v36   ;;  %v546_v63 = vadd.f32 1e-10, %v537_v44 }
 0x22d   : > { %560 = vperm.xlu1 %831, %v542_v56  }
 0x231   : > { %565 = vperm.xlu1 %831, %v543_v59  }
 0x235   : > { %570 = vperm.xlu1 %831, %v544_v26  }
 0x239   : > { %575 = vperm.xlu1 %831, %v545_v62  }
 0x23d   : > { %580 = vperm.xlu1 %831, %v546_v63  }
 0x29f   : > { %v586_v8 = vpop.permute.xlu0 %585 }
 0x2a0   : > { %v551_v1 = vpop.permute.xlu1 %550  ;;  %v595_v12 = vmul.f32 %v586_v8, %v1137_v18 }
 0x2a1   : > { %v588_v4 = vmul.f32 %v551_v1, %v1110_v0 }
 0x2a2   : > { %v645_v19 = vsel %vm259_vm0, %v595_v12, 0.0 }
 0x2a3   : > { %v596_v11 = vsel %vm259_vm0, %v588_v4, 0.0  ;;  %v646_v28 = vrot.slane %v645_v19, 4 }
 0x2a4   : > { %v556_v50 = vpop.permute.xlu1 %555  ;;  %v597_v15 = vrot.slane %v596_v11, 4 }
 0x2a5   : > { %v589_v3 = vmul.f32 %v556_v50, %v1119_v5  ;;  %v647_v45 = vadd.f32 %v646_v28, %v645_v19 }
 0x2a6   : > { %v598_v22 = vadd.f32 %v597_v15, %v596_v11 }
 0x2a7   : > { %v603_v46 = vsel %vm259_vm0, %v589_v3, 0.0  ;;  %v648_v36 = vrot.slane %v647_v45, 2 }
 0x2a8   : > { %v561_v7 = vpop.permute.xlu1 %560  ;;  %v604_v25 = vrot.slane %v603_v46, 4 }
 0x2a9   : > { %v590_v53 = vmul.f32 %v561_v7, %v1115_v2  ;;  %v649_v40 = vadd.f32 %v648_v36, %v647_v45 }
 0x2aa   : > { %v605_v16 = vadd.f32 %v604_v25, %v603_v46 }
 0x2ab   : > { %v610_v52 = vsel %vm259_vm0, %v590_v53, 0.0  ;;  %v650_v4 = vrot.slane %v649_v40, 1 }
 0x2ac   : > { %v611_v13 = vrot.slane %v610_v52, 4  ;;  %v566_v14 = vpop.permute.xlu1 %565  ;;  %v606_v29 = vrot.slane %v605_v16, 2 }
 0x2ad   : > { %v591_v5 = vmul.f32 %v566_v14, %v1121_v6  ;;  %v599_v6 = vrot.slane %v598_v22, 2  ;;  %v651_v12 = vadd.f32 %v650_v4, %v649_v40 }
 0x2ae   : > { %v612_v20 = vadd.f32 %v611_v13, %v610_v52  ;;  %v607_v27 = vadd.f32 %v606_v29, %v605_v16 }
 0x2af   : > { %v617_v0 = vsel %vm259_vm0, %v591_v5, 0.0  ;;  %v600_v32 = vadd.f32 %v599_v6, %v598_v22 }
 0x2b0   : > { %v618_v21 = vrot.slane %v617_v0, 4  ;;  %v571_v2 = vpop.permute.xlu1 %570  ;;  %v613_v31 = vrot.slane %v612_v20, 2  ;;  %v608_v57 = vrot.slane %v607_v27, 1 }
 0x2b1   : > { %v592_v23 = vmul.f32 %v571_v2, %v1125_v9  ;;  %v601_v58 = vrot.slane %v600_v32, 1 }
 0x2b2   : > { %v619_v24 = vadd.f32 %v618_v21, %v617_v0  ;;  %v614_v47 = vadd.f32 %v613_v31, %v612_v20  ;;  %v609_v61 = vadd.f32 %v608_v57, %v607_v27 }
 0x2b3   : > { %v624_v18 = vsel %vm259_vm0, %v592_v23, 0.0  ;;  %v602_v63 = vadd.f32 %v601_v58, %v600_v32 }
 0x2b4   : > { %v625_v35 = vrot.slane %v624_v18, 4  ;;  %v576_v37 = vpop.permute.xlu1 %575  ;;  %v620_v41 = vrot.slane %v619_v24, 2  ;;  %v615_v38 = vrot.slane %v614_v47, 1 }
 0x2b5   : > { %v593_v43 = vmul.f32 %v576_v37, %v1127_v10  ;;  %v660_v46 = vsel %vm464_vm1, %v609_v61, %v602_v63 }
 0x2b6   : > { %v626_v42 = vadd.f32 %v625_v35, %v624_v18  ;;  %v621_v51 = vadd.f32 %v620_v41, %v619_v24 }
 0x2b7   : > { %v631_v30 = vsel %vm259_vm0, %v593_v43, 0.0 }
 0x2b8   : > { %v627_v48 = vrot.slane %v626_v42, 2  ;;  %v632_v9 = vrot.slane %v631_v30, 4  ;;  %v581_v49 = vpop.permute.xlu1 %580  ;;  %v622_v59 = vrot.slane %v621_v51, 1 }
 0x2b9   : > { %v594_v54 = vmul.f32 %v581_v49, %v1135_v17  ;;  %v616_v17 = vadd.f32 %v615_v38, %v614_v47 }
 0x2ba   : > { %v628_v33 = vadd.f32 %v627_v48, %v626_v42  ;;  %v633_v55 = vadd.f32 %v632_v9, %v631_v30  ;;  %v623_v1 = vadd.f32 %v622_v59, %v621_v51 }
 0x2bb   : > { %v638_v10 = vsel %vm259_vm0, %v594_v54, 0.0  ;;  %v661_v8 = vsel %vm466_vm2, %v616_v17, %v660_v46 }
 0x2bc   : > { %v634_v56 = vrot.slane %v633_v55, 2  ;;  %v639_v34 = vrot.slane %v638_v10, 4  ;;  %v629_v39 = vrot.slane %v628_v33, 1  ;;  %v662_v11 = vsel %vm468_vm3, %v623_v1, %v661_v8 }
 0x2be   : > { %v635_v60 = vadd.f32 %v634_v56, %v633_v55  ;;  %v640_v26 = vadd.f32 %v639_v34, %v638_v10  ;;  %v630_v50 = vadd.f32 %v629_v39, %v628_v33 }
 0x2c0   : > { %v636_v62 = vrot.slane %v635_v60, 1  ;;  %v641_v44 = vrot.slane %v640_v26, 2  ;;  %v663_v25 = vsel %vm470_vm4, %v630_v50, %v662_v11 }
 0x2c2   : > { %v642_v3 = vadd.f32 %v641_v44, %v640_v26  ;;  %v637_v7 = vadd.f32 %v636_v62, %v635_v60 }
 0x2c4   : > { %v643_v53 = vrot.slane %v642_v3, 1  ;;  %v664_v13 = vsel %vm472_vm5, %v637_v7, %v663_v25 }
 0x2c6   : > { %v644_v52 = vadd.f32 %v643_v53, %v642_v3 }
 0x2c8   : > { %v665_v14 = vsel %vm474_vm6, %v644_v52, %v664_v13 }
 0x2c9   : > { %v666_v15 = vsel %vm476_vm7, %v651_v12, %v665_v14 }
 0x2ca   : > { %668 = vst.msk [vmem:[%s228_s7] sm:$0xff] %vm259_vm0, %v666_v15 }
 0x2cb   : > { %922 = shalt.err (!%p919_p0)
}
 0x2cc   : > { %s923_s12 = scalar_lea.hbm %s1260_s22, 128  ;;  %s927_s25 = scalar_lea.hbm %s1303_s4, 256 }
 0x2cd   : > { %p924_p2 = scmp.ne.s32.totalorder %s1260_s22, %s923_s12  ;;  %p928_p3 = scmp.lt.s32.totalorder %s1260_s22, %s1303_s4 }
 0x2ce   : > { %p929_p6 = scmp.lt.s32.totalorder %s927_s25, %s923_s12 }
 0x2cf   : > { %p925_p9 = pnand %p924_p2, %p1312_p13 }
 0x2d0   : > { %p930_p11 = por %p929_p6, %p928_p3 }
 0x2d1   : > { %p926_p1 = pneg %p925_p9 }
 0x2d3   : > { %p931_p12 = pnand %p930_p11, %p926_p1 }
 0x2d5   : > { %934 = shalt.err (!%p931_p12)
}
 0x2d6   : > { %784 = dma.vmem_to_hbm [thread:$0]  (%p1312_p13), %s684_s9, 128, %s1260_s22, %s670_s19  }
 0x2d7 PF: > { %s695_s5 = sand.u32 1, %s961_s15   ;;  %p1313_p4 = scmp.ne.s32.totalorder %s1309_s28, 0 }
 0x2d8   : > { %p1314_p5 = scmp.ge.s32.totalorder %s973_s18, 2  ;;  %s696_s6 = scalar_lea.sflag [#allocation4], %s695_s5 }
 0x2da   : > { %p791_p7 = pnand %p1314_p5, %p1313_p4 }
 0x2dc   : > { %p792_p8 = pneg %p791_p7 }
 0x2de   : > { %956 = dma.done.wait (%p792_p8), %s696_s6, 128  }
 0x2df   : > { %958 = vsyncadd (%p792_p8), %s696_s6, 4294967168  ;;  %p17_p10 = scmp.ge.s32.totalorder %s1030_s21, 4   ;;  %s1315_s15 = smov %s965_s16 }
 0x2e0   : > { %s1316_s16 = smov %s969_s17  ;;  %s1317_s17 = smov %s1042_s24 }
 0x2e1   : > { %s1318_s18 = smov %s1030_s21  ;;  %19 = sbr.rel (!%p17_p10) target bundleno = 5 (0x5), region = 84 }
 0x2e6   :  { %701 = vsyncpa [#allocation3], 1 }
 0x2e7   :  { %703 = vsyncpa [#allocation3 + $0x1], 1 }
 0x2e8   :  { %704 = vsyncpa [#allocation4], 1 }
 0x2e9   :  { %706 = vsyncpa [#allocation4 + $0x1], 1 }

</bundles_post_ra>
